<compile_context>
chip_gen: v5e
topology: v5e:2x2
jax: 0.10.0
libtpu: 0.0.40
codegen_flags: <defaults>
</compile_context>

<pallas_src>
import functools

import jax
import jax.numpy as jnp
from jax.experimental import pallas as pl
from jax.experimental.pallas import tpu as pltpu

_IN_FEATURES = 28 * 28
_N_CLASSES = 10
_PAD_CLASSES = 128          # lane-dense output width (one full vreg lane span)
_NEG_BIAS = -1e9            # bias for padded logit columns (exp underflows to 0)


def _mlp_kernel(x_ref, w1_ref, b1_ref, wx_ref, bx_ref, w2_ref, b2_ref, o_ref):
    """One batch tile: fc1+softplus -> fcX+relu -> fc2+log_softmax."""
    # In-kernel cast: x streamed in its native dtype, converted on the VPU.
    x = x_ref[...].astype(jnp.bfloat16)                               # (TB, 784)

    # fc1 + softplus (numerically stable: max(z,0) + log1p(exp(-|z|)))
    z1 = jnp.dot(x, w1_ref[...], preferred_element_type=jnp.float32) + b1_ref[...]
    h1 = jnp.maximum(z1, 0.0) + jnp.log1p(jnp.exp(-jnp.abs(z1)))

    # fcX + relu
    z2 = jnp.dot(h1.astype(jnp.bfloat16), wx_ref[...],
                 preferred_element_type=jnp.float32) + bx_ref[...]
    h2 = jnp.maximum(z2, 0.0)

    # fc2 (padded to 128 output lanes; padded columns carry -1e9 bias so they
    # contribute exp(...) = 0 to the reduction) + log_softmax along dim=1
    logits = jnp.dot(h2.astype(jnp.bfloat16), w2_ref[...],
                     preferred_element_type=jnp.float32) + b2_ref[...]
    m = jnp.max(logits, axis=-1, keepdims=True)
    lse = m + jnp.log(jnp.sum(jnp.exp(logits - m), axis=-1, keepdims=True))
    o_ref[...] = logits - lse


# ----------------------------------------------------------------------------
# One-time parameter preparation (hoisted out of the per-call forward path).
# ----------------------------------------------------------------------------
def prepare_params(w1, b1, wX, bX, w2, b2):
    """bf16 matmul weights + lane-dense (128-wide) fc2 padding. Call once."""
    w1_bf = jnp.asarray(w1, jnp.bfloat16)
    wX_bf = jnp.asarray(wX, jnp.bfloat16)
    n = w2.shape[0]
    w2_p = jnp.zeros((n, _PAD_CLASSES), jnp.float32).at[:, :_N_CLASSES].set(w2)
    w2_p = w2_p.astype(jnp.bfloat16)
    b2_p = jnp.full((1, _PAD_CLASSES), _NEG_BIAS, jnp.float32)
    b2_p = b2_p.at[:, :_N_CLASSES].set(jnp.asarray(b2, jnp.float32).reshape(1, -1))
    b1_r = jnp.asarray(b1, jnp.float32).reshape(1, -1)
    bX_r = jnp.asarray(bX, jnp.float32).reshape(1, -1)
    return w1_bf, b1_r, wX_bf, bX_r, w2_p, b2_p


# ----------------------------------------------------------------------------
# Tiling / VMEM budgeting (generation-aware).
# ----------------------------------------------------------------------------
def _vmem_budgets():
    """Returns (per-tile footprint budget, scoped vmem_limit_bytes)."""
    vmem_phys = 64 << 20                        # conservative default (v7x-sized)
    try:
        vmem_phys = int(pltpu.get_tpu_info().vmem_capacity_bytes)
    except Exception:
        pass
    if vmem_phys >= (128 << 20):                # v5e / v6e: exploit 128 MiB VMEM
        return 48 << 20, 96 << 20
    return 20 << 20, 36 << 20                   # v7x: 64 MiB part, leave headroom


def _vmem_estimate_bytes(tb, n):
    bf16, f32 = 2, 4
    x_tile = tb * _IN_FEATURES * f32            # x streamed in native f32
    o_tile = tb * _PAD_CLASSES * f32
    weights = (_IN_FEATURES * n + n * n + n * _PAD_CLASSES) * bf16   # single-buffered
    biases = (2 * n + _PAD_CLASSES) * f32
    acts = tb * (2 * n + 2 * _PAD_CLASSES) * f32 + tb * (_IN_FEATURES + n) * bf16
    # x / output tiles double-buffered by the pipeline; weights single-buffered.
    return 2 * (x_tile + o_tile) + weights + biases + acts


def _pick_batch_tile(batch, n, budget):
    if batch < 16:
        return batch                            # one full-extent tile (tiny batches)
    # Guarantee >= 2 grid steps so ("parallel",) feeds both v7x TensorCores.
    cap = max(8, (batch // 2) // 8 * 8)
    for tb in (8192, 4096, 2048, 1024, 512, 256, 128, 64, 32, 16, 8):
        if tb <= cap and _vmem_estimate_bytes(tb, n) <= budget:
            return tb
    return 8


def _block_spec(shape, index_map, *, buffers=None):
    """BlockSpec with optional explicit buffer count (falls back gracefully)."""
    if buffers is not None and hasattr(pl, "Buffered"):
        try:
            return pl.BlockSpec(shape, index_map, pipeline_mode=pl.Buffered(buffers))
        except TypeError:
            pass
    return pl.BlockSpec(shape, index_map)


# ----------------------------------------------------------------------------
# Forward pass.
# ----------------------------------------------------------------------------
@functools.partial(jax.jit, static_argnames=("tile_batch", "return_padded"))
def two_layer_softplus_rect(x_flat, w1_bf, b1, wX_bf, bX, w2_p, b2_p,
                            *, tile_batch=None, return_padded=False):
    batch = x_flat.shape[0]
    n = w1_bf.shape[1]
    budget, vmem_limit = _vmem_budgets()

    if tile_batch is None:
        tb = _pick_batch_tile(batch, n, budget)
    else:
        tb = min(int(tile_batch), batch)
        if tb != batch and tb % 8 != 0:         # (8,128) sublane rule for blocks
            tb = max(8, (tb // 8) * 8)

    resident = lambda i: (0, 0)                 # weights/biases: same block all steps
    out_pad = pl.pallas_call(
        _mlp_kernel,
        out_shape=jax.ShapeDtypeStruct((batch, _PAD_CLASSES), jnp.float32),
        grid=(pl.cdiv(batch, tb),),
        in_specs=[
            pl.BlockSpec((tb, _IN_FEATURES), lambda i: (i, 0)),        # x (streamed)
            _block_spec((_IN_FEATURES, n), resident, buffers=1),        # w1
            _block_spec((1, n), resident, buffers=1),                   # b1
            _block_spec((n, n), resident, buffers=1),                   # wX
            _block_spec((1, n), resident, buffers=1),                   # bX
            _block_spec((n, _PAD_CLASSES), resident, buffers=1),        # w2 (padded)
            _block_spec((1, _PAD_CLASSES), resident, buffers=1),        # b2 (padded)
        ],
        out_specs=pl.BlockSpec((tb, _PAD_CLASSES), lambda i: (i, 0)),
        compiler_params=pltpu.CompilerParams(
            dimension_semantics=("parallel",),
            vmem_limit_bytes=int(vmem_limit),
        ),
    )(x_flat, w1_bf, b1, wX_bf, bX, w2_p, b2_p)

    if return_padded:
        # Padded columns are ~ -1e9 - lse; NLL / argmax consumers can index
        # the first 10 columns lazily and skip a full slice pass over HBM.
        return out_pad
    return out_pad[:, :_N_CLASSES]


# ----------------------------------------------------------------------------
# Init + references.
# ----------------------------------------------------------------------------
def init_params(key, n_neurones):
    """PyTorch-style uniform(-1/sqrt(fan_in), 1/sqrt(fan_in)) init.

    Weights stored as (in_features, out_features) so layers are x @ W + b."""
    ks = jax.random.split(key, 6)

    def lin(kw, kb, fan_in, fan_out):
        bound = 1.0 / jnp.sqrt(fan_in)
        w = jax.random.uniform(kw, (fan_in, fan_out), jnp.float32, -bound, bound)
        b = jax.random.uniform(kb, (1, fan_out), jnp.float32, -bound, bound)
        return w, b

    w1, b1 = lin(ks[0], ks[1], _IN_FEATURES, n_neurones)
    wX, bX = lin(ks[2], ks[3], n_neurones, n_neurones)
    w2, b2 = lin(ks[4], ks[5], n_neurones, _N_CLASSES)
    return w1, b1, wX, bX, w2, b2


def reference_forward_f32(x_flat, w1, b1, wX, bX, w2, b2):
    h1 = jax.nn.softplus(x_flat @ w1 + b1)
    h2 = jnp.maximum(h1 @ wX + bX, 0.0)
    return jax.nn.log_softmax(h2 @ w2 + b2, axis=1)


def reference_forward_bf16(x_flat, w1, b1, wX, bX, w2, b2):
    """Mirrors the kernel's bf16 matmul operands / f32 accumulation."""
    bf = jnp.bfloat16

    def mm(a, b):
        return jnp.dot(a.astype(bf), b.astype(bf), preferred_element_type=jnp.float32)

    h1 = jax.nn.softplus(mm(x_flat, w1) + b1)
    h2 = jnp.maximum(mm(h1, wX) + bX, 0.0)
    return jax.nn.log_softmax(mm(h2, w2) + b2, axis=1)


if __name__ == "__main__":
    key = jax.random.PRNGKey(0)
    k_img, k_params, k_img2 = jax.random.split(key, 3)

    n_neurones = 32
    # nLayer is stored by the PyTorch module but unused in forward (fcX applied once).

    raw = init_params(k_params, n_neurones)
    params = prepare_params(*raw)            # one-time bf16 cast + lane padding

    # --- small-shape run (required): batch=2, single full-extent tile -------
    batch = 2
    image = jax.random.normal(k_img, (batch, 1, 28, 28), jnp.float32)  # NCHW
    x_flat = image.reshape(batch, -1)                                  # == .view(B, -1)

    out = jax.block_until_ready(two_layer_softplus_rect(x_flat, *params))
    assert out.shape == (batch, _N_CLASSES)
    ref_bf16 = reference_forward_bf16(x_flat, *raw)
    ref_f32 = reference_forward_f32(x_flat, *raw)
    assert jnp.allclose(out, ref_bf16, atol=1e-2, rtol=1e-3), "mismatch vs bf16 reference"
    assert jnp.allclose(out, ref_f32, atol=5e-2), "mismatch vs f32 reference"

    # --- multi-tile grid path check (default tile picker -> >= 2 steps) -----
    batch2 = 32
    image2 = jax.random.normal(k_img2, (batch2, 1, 28, 28), jnp.float32)
    x2 = image2.reshape(batch2, -1)
    out2 = jax.block_until_ready(two_layer_softplus_rect(x2, *params))
    assert out2.shape == (batch2, _N_CLASSES)
    ref2 = reference_forward_bf16(x2, *raw)
    assert jnp.allclose(out2, ref2, atol=1e-2, rtol=1e-3), "mismatch on tiled grid path"

    print("KERNEL_OK")
</pallas_src>

<mosaic_0001>
module attributes {stable_mosaic.version = 11 : i64} {
  func.func @_mlp_kernel(%arg0: i32, %arg1: memref<2x784xf32, #tpu.memory_space<vmem>>, %arg2: memref<784x32xbf16, #tpu.memory_space<vmem>>, %arg3: memref<1x32xf32, #tpu.memory_space<vmem>>, %arg4: memref<32x32xbf16, #tpu.memory_space<vmem>>, %arg5: memref<1x32xf32, #tpu.memory_space<vmem>>, %arg6: memref<32x128xbf16, #tpu.memory_space<vmem>>, %arg7: memref<1x128xf32, #tpu.memory_space<vmem>>, %arg8: memref<2x128xf32, #tpu.memory_space<vmem>>) attributes {dimension_semantics = [#tpu.dimension_semantics<parallel>], iteration_bounds = array<i64: 1>, scalar_prefetch = 0 : i64, scratch_operands = 0 : i64, tpu.core_type = #tpu.core_type<tc>, window_params = [{transform_indices = @transform_0, window_bounds = array<i64: 2, 784>}, {pipeline_mode = #tpu.pipeline_mode<synchronous>, transform_indices = @transform_1, window_bounds = array<i64: 784, 32>}, {pipeline_mode = #tpu.pipeline_mode<synchronous>, transform_indices = @transform_2, window_bounds = array<i64: 1, 32>}, {pipeline_mode = #tpu.pipeline_mode<synchronous>, transform_indices = @transform_3, window_bounds = array<i64: 32, 32>}, {pipeline_mode = #tpu.pipeline_mode<synchronous>, transform_indices = @transform_4, window_bounds = array<i64: 1, 32>}, {pipeline_mode = #tpu.pipeline_mode<synchronous>, transform_indices = @transform_5, window_bounds = array<i64: 32, 128>}, {pipeline_mode = #tpu.pipeline_mode<synchronous>, transform_indices = @transform_6, window_bounds = array<i64: 1, 128>}, {transform_indices = @transform_7, window_bounds = array<i64: 2, 128>}]} {
    %c0 = arith.constant 0 : index
    %c0_0 = arith.constant 0 : index
    %0 = vector.load %arg1[%c0, %c0_0] : memref<2x784xf32, #tpu.memory_space<vmem>>, vector<2x784xf32>
    %1 = arith.truncf %0 : vector<2x784xf32> to vector<2x784xbf16>
    %c0_1 = arith.constant 0 : index
    %c0_2 = arith.constant 0 : index
    %2 = vector.load %arg2[%c0_1, %c0_2] : memref<784x32xbf16, #tpu.memory_space<vmem>>, vector<784x32xbf16>
    %cst = arith.constant dense<0.000000e+00> : vector<2x32xf32>
    %3 = tpu.matmul %1, %2, %cst {dimension_numbers = #tpu.dot_dimension_numbers<[1], [0], [0], [1], [0, 0, 1, 1], [], []>} : vector<2x784xbf16>, vector<784x32xbf16>, vector<2x32xf32> -> vector<2x32xf32>
    %c0_3 = arith.constant 0 : index
    %c0_4 = arith.constant 0 : index
    %4 = vector.load %arg3[%c0_3, %c0_4] : memref<1x32xf32, #tpu.memory_space<vmem>>, vector<1x32xf32>
    %5 = vector.broadcast %4 : vector<1x32xf32> to vector<2x32xf32>
    %6 = arith.addf %3, %5 : vector<2x32xf32>
    %cst_5 = arith.constant 0.000000e+00 : f32
    %7 = vector.broadcast %cst_5 : f32 to vector<2x32xf32>
    %8 = arith.maximumf %6, %7 : vector<2x32xf32>
    %9 = math.absf %6 : vector<2x32xf32>
    %cst_6 = arith.constant 0.000000e+00 : f32
    %10 = vector.broadcast %cst_6 : f32 to vector<2x32xf32>
    %11 = arith.subf %10, %9 : vector<2x32xf32>
    %12 = math.exp %11 : vector<2x32xf32>
    %13 = math.log1p %12 : vector<2x32xf32>
    %14 = arith.addf %8, %13 : vector<2x32xf32>
    %15 = arith.truncf %14 : vector<2x32xf32> to vector<2x32xbf16>
    %c0_7 = arith.constant 0 : index
    %c0_8 = arith.constant 0 : index
    %16 = vector.load %arg4[%c0_7, %c0_8] : memref<32x32xbf16, #tpu.memory_space<vmem>>, vector<32x32xbf16>
    %cst_9 = arith.constant dense<0.000000e+00> : vector<2x32xf32>
    %17 = tpu.matmul %15, %16, %cst_9 {dimension_numbers = #tpu.dot_dimension_numbers<[1], [0], [0], [1], [0, 0, 1, 1], [], []>} : vector<2x32xbf16>, vector<32x32xbf16>, vector<2x32xf32> -> vector<2x32xf32>
    %c0_10 = arith.constant 0 : index
    %c0_11 = arith.constant 0 : index
    %18 = vector.load %arg5[%c0_10, %c0_11] : memref<1x32xf32, #tpu.memory_space<vmem>>, vector<1x32xf32>
    %19 = vector.broadcast %18 : vector<1x32xf32> to vector<2x32xf32>
    %20 = arith.addf %17, %19 : vector<2x32xf32>
    %cst_12 = arith.constant 0.000000e+00 : f32
    %21 = vector.broadcast %cst_12 : f32 to vector<2x32xf32>
    %22 = arith.maximumf %20, %21 : vector<2x32xf32>
    %23 = arith.truncf %22 : vector<2x32xf32> to vector<2x32xbf16>
    %c0_13 = arith.constant 0 : index
    %c0_14 = arith.constant 0 : index
    %24 = vector.load %arg6[%c0_13, %c0_14] : memref<32x128xbf16, #tpu.memory_space<vmem>>, vector<32x128xbf16>
    %cst_15 = arith.constant dense<0.000000e+00> : vector<2x128xf32>
    %25 = tpu.matmul %23, %24, %cst_15 {dimension_numbers = #tpu.dot_dimension_numbers<[1], [0], [0], [1], [0, 0, 1, 1], [], []>} : vector<2x32xbf16>, vector<32x128xbf16>, vector<2x128xf32> -> vector<2x128xf32>
    %c0_16 = arith.constant 0 : index
    %c0_17 = arith.constant 0 : index
    %26 = vector.load %arg7[%c0_16, %c0_17] : memref<1x128xf32, #tpu.memory_space<vmem>>, vector<1x128xf32>
    %27 = vector.broadcast %26 : vector<1x128xf32> to vector<2x128xf32>
    %28 = arith.addf %25, %27 : vector<2x128xf32>
    %cst_18 = arith.constant dense<0xFF800000> : vector<2xf32>
    %29 = vector.multi_reduction <maximumf>, %28, %cst_18 [1] : vector<2x128xf32> to vector<2xf32>
    %30 = vector.shape_cast %29 : vector<2xf32> to vector<2x1xf32>
    %31 = vector.broadcast %30 : vector<2x1xf32> to vector<2x128xf32>
    %32 = arith.subf %28, %31 : vector<2x128xf32>
    %33 = math.exp %32 : vector<2x128xf32>
    %cst_19 = arith.constant dense<0.000000e+00> : vector<2xf32>
    %34 = vector.multi_reduction <add>, %33, %cst_19 [1] : vector<2x128xf32> to vector<2xf32>
    %35 = vector.shape_cast %34 : vector<2xf32> to vector<2x1xf32>
    %36 = math.log %35 : vector<2x1xf32>
    %37 = arith.addf %30, %36 : vector<2x1xf32>
    %38 = vector.broadcast %37 : vector<2x1xf32> to vector<2x128xf32>
    %39 = arith.subf %28, %38 : vector<2x128xf32>
    %c0_20 = arith.constant 0 : index
    %c0_21 = arith.constant 0 : index
    %40 = vector.load %arg8[%c0_20, %c0_21] : memref<2x128xf32, #tpu.memory_space<vmem>>, vector<2x128xf32>
    tpu.vector_store %arg8[%c0_20, %c0_21], %39 {strides = array<i32>} : memref<2x128xf32, #tpu.memory_space<vmem>>, vector<2x128xf32>,
    return
  }
  func.func @transform_0(%arg0: i32) -> (i32, i32) {
    %c0_i32 = arith.constant 0 : i32
    %c0_i32_0 = arith.constant 0 : i32
    return %arg0, %c0_i32 : i32, i32
  }
  func.func @transform_1(%arg0: i32) -> (i32, i32) {
    %c0_i32 = arith.constant 0 : i32
    %c0_i32_0 = arith.constant 0 : i32
    %c0_i32_1 = arith.constant 0 : i32
    return %c0_i32, %c0_i32_0 : i32, i32
  }
  func.func @transform_2(%arg0: i32) -> (i32, i32) {
    %c0_i32 = arith.constant 0 : i32
    %c0_i32_0 = arith.constant 0 : i32
    %c0_i32_1 = arith.constant 0 : i32
    return %c0_i32, %c0_i32_0 : i32, i32
  }
  func.func @transform_3(%arg0: i32) -> (i32, i32) {
    %c0_i32 = arith.constant 0 : i32
    %c0_i32_0 = arith.constant 0 : i32
    %c0_i32_1 = arith.constant 0 : i32
    return %c0_i32, %c0_i32_0 : i32, i32
  }
  func.func @transform_4(%arg0: i32) -> (i32, i32) {
    %c0_i32 = arith.constant 0 : i32
    %c0_i32_0 = arith.constant 0 : i32
    %c0_i32_1 = arith.constant 0 : i32
    return %c0_i32, %c0_i32_0 : i32, i32
  }
  func.func @transform_5(%arg0: i32) -> (i32, i32) {
    %c0_i32 = arith.constant 0 : i32
    %c0_i32_0 = arith.constant 0 : i32
    %c0_i32_1 = arith.constant 0 : i32
    return %c0_i32, %c0_i32_0 : i32, i32
  }
  func.func @transform_6(%arg0: i32) -> (i32, i32) {
    %c0_i32 = arith.constant 0 : i32
    %c0_i32_0 = arith.constant 0 : i32
    %c0_i32_1 = arith.constant 0 : i32
    return %c0_i32, %c0_i32_0 : i32, i32
  }
  func.func @transform_7(%arg0: i32) -> (i32, i32) {
    %c0_i32 = arith.constant 0 : i32
    %c0_i32_0 = arith.constant 0 : i32
    return %arg0, %c0_i32 : i32, i32
  }
}

</mosaic_0001>

<bundles_post_ra>
// kernel: two_layer_softplus_rect.1
= control target key start
LH: loop header
LB: loop body
LE: loop exit
PB: predicated region body
PF: predicated region fallthrough
CT: control target
= control target key end

     0   :  { %s1193_s0 = inlined_call_operand.vmem [shape: f32[2,784], index: 0, kind: input, shape index: {}]   ;;  %s1194_s1 = inlined_call_operand.vmem [shape: bf16[784,32], index: 1, kind: input, shape index: {}]   ;;  %s1195_s2 = inlined_call_operand.vmem [shape: f32[1,32], index: 2, kind: input, shape index: {}]   ;;  %s1196_s3 = inlined_call_operand.vmem [shape: bf16[32,32], index: 3, kind: input, shape index: {}]   ;;  %s1197_s4 = inlined_call_operand.vmem [shape: f32[1,32], index: 4, kind: input, shape index: {}]   ;;  %s1198_s5 = inlined_call_operand.vmem [shape: bf16[32,128], index: 5, kind: input, shape index: {}]   ;;  %s1199_s6 = inlined_call_operand.vmem [shape: f32[1,128], index: 6, kind: input, shape index: {}]   ;;  %s1200_s7 = inlined_call_operand.hbm [shape: f32[2,128], index: 7, kind: output, shape index: {}]  }
   0x1   :  { %v891_v0 = vld [vmem:[%s1194_s1 + $0x38] sm:$0xff]  ;;  %v890_v3 = vld [vmem:[%s1194_s1 + $0x30] sm:$0xff]  ;;  %v889_v8 = vld [vmem:[%s1194_s1 + $0x28] sm:$0xff] }
   0x2   :  { %v899_v1 = vld [vmem:[%s1194_s1 + $0x78] sm:$0xff]  ;;  %456 = vmatpush.bf16.msra.mxu0 %v891_v0  ;;  %v898_v4 = vld [vmem:[%s1194_s1 + $0x70] sm:$0xff]  ;;  %v897_v9 = vld [vmem:[%s1194_s1 + $0x68] sm:$0xff] }
   0x3   :  { %v907_v2 = vld [vmem:[%s1194_s1 + $0xb8] sm:$0xff]  ;;  %469 = vmatpush.bf16.msra.mxu1 %v899_v1  ;;  %v906_v5 = vld [vmem:[%s1194_s1 + $0xb0] sm:$0xff]  ;;  %v905_v10 = vld [vmem:[%s1194_s1 + $0xa8] sm:$0xff] }
   0x4   :  { %482 = vmatpush.bf16.msra.mxu2 %v907_v2  ;;  %v915_v6 = vld [vmem:[%s1194_s1 + $0xf8] sm:$0xff]  ;;  %v914_v7 = vld [vmem:[%s1194_s1 + $0xf0] sm:$0xff]  ;;  %v913_v11 = vld [vmem:[%s1194_s1 + $0xe8] sm:$0xff] }
   0x5   :  { %495 = vmatpush.bf16.msra.mxu3 %v915_v6  ;;  %v888_v12 = vld [vmem:[%s1194_s1 + $0x20] sm:$0xff]  ;;  %v887_v17 = vld [vmem:[%s1194_s1 + $0x18] sm:$0xff]  ;;  %v29_v19 = vld [vmem:[%s1193_s0 + $0x8] sm:$0x3f] }
   0x6   :  { %457 = vmatpush.bf16.msra.mxu0 %v890_v3  ;;  %v896_v13 = vld [vmem:[%s1194_s1 + $0x60] sm:$0xff]  ;;  %v895_v18 = vld [vmem:[%s1194_s1 + $0x58] sm:$0xff]  ;;  %34 = vst [vmem:[#allocation1 + $0x20] ss:$4 sm:$0xff] %v29_v19 }
   0x7   :  { %470 = vmatpush.bf16.msra.mxu1 %v898_v4  ;;  %v904_v14 = vld [vmem:[%s1194_s1 + $0xa0] sm:$0xff]  ;;  %v903_v20 = vld [vmem:[%s1194_s1 + $0x98] sm:$0xff] }
   0x8   :  { %483 = vmatpush.bf16.msra.mxu2 %v906_v5  ;;  %v28_v15 = vld [vmem:[%s1193_s0] sm:$0xff] }
   0x9   :  { %496 = vmatpush.bf16.msra.mxu3 %v914_v7  ;;  %32 = vst [vmem:[#allocation1] ss:$4 sm:$0xff] %v28_v15  ;;  %v912_v16 = vld [vmem:[%s1194_s1 + $0xe0] sm:$0xff] }
   0xa   :  { %458 = vmatpush.bf16.msra.mxu0 %v889_v8 }
   0xb   :  { %471 = vmatpush.bf16.msra.mxu1 %v897_v9 }
   0xc   :  { %484 = vmatpush.bf16.msra.mxu2 %v905_v10 }
   0xd   :  { %497 = vmatpush.bf16.msra.mxu3 %v913_v11 }
   0xe   :  { %459 = vmatpush.bf16.msra.mxu0 %v888_v12 }
   0xf   :  { %472 = vmatpush.bf16.msra.mxu1 %v896_v13 }
  0x10   :  { %485 = vmatpush.bf16.msra.mxu2 %v904_v14 }
  0x11   :  { %12 = vsyncpa [#allocation3], 0  ;;  %498 = vmatpush.bf16.msra.mxu3 %v912_v16  ;;  %v911_v21 = vld [vmem:[%s1194_s1 + $0xd8] sm:$0xff]  ;;  %v886_v22 = vld [vmem:[%s1194_s1 + $0x10] sm:$0xff]  ;;  %vm452_vm0 = vcmask 130048   ;;  %vm583_vm2 = vcmask 261120  }
  0x12   :  { %460 = vmatpush.bf16.msra.mxu0 %v887_v17  ;;  %v894_v23 = vld [vmem:[%s1194_s1 + $0x50] sm:$0xff]  ;;  %v885_v26 = vld [vmem:[%s1194_s1 + $0x8] sm:$0xff]  ;;  %v884_v29 = vld [vmem:[%s1194_s1] sm:$0xff]  ;;  %vm638_vm3 = vcmask 1041408   ;;  %s660_s20 = sshll.u32 %s1200_s7, 4  ;;  %s661_s20 = int_to_ptr.hbm [resolvable:$true] %s660_s20 }
  0x13   :  { %473 = vmatpush.bf16.msra.mxu1 %v895_v18  ;;  %v902_v24 = vld [vmem:[%s1194_s1 + $0x90] sm:$0xff]  ;;  %v893_v27 = vld [vmem:[%s1194_s1 + $0x48] sm:$0xff]  ;;  %v892_v30 = vld [vmem:[%s1194_s1 + $0x40] sm:$0xff] }
  0x14   :  { %486 = vmatpush.bf16.msra.mxu2 %v903_v20  ;;  %v910_v25 = vld [vmem:[%s1194_s1 + $0xd0] sm:$0xff]  ;;  %v901_v28 = vld [vmem:[%s1194_s1 + $0x88] sm:$0xff]  ;;  %v35_v32 = vld.sshfl [vmem:[#allocation1] sm:$0xff pattern:$0x73625140] }
  0x15   :  { %499 = vmatpush.bf16.msra.mxu3 %v911_v21  ;;  %v909_v31 = vld [vmem:[%s1194_s1 + $0xc8] sm:$0xff]  ;;  %v923_v34 = vld [vmem:[%s1194_s1 + $0x138] sm:$0xff]  ;;  %v900_v36 = vld [vmem:[%s1194_s1 + $0x80] sm:$0xff]  ;;  %v49_v38 = vpack.c.bf16 %v35_v32, %v35_v32 }
  0x16   :  { %461 = vmatpush.bf16.msra.mxu0 %v886_v22  ;;  %v36_v33 = vld.sshfl [vmem:[#allocation1 + $0x8] sm:$0xff pattern:$0x73625140]  ;;  %v931_v35 = vld [vmem:[%s1194_s1 + $0x178] sm:$0xff]  ;;  %v908_v40 = vld [vmem:[%s1194_s1 + $0xc0] sm:$0xff] }
  0x17   :  { %474 = vmatpush.bf16.msra.mxu1 %v894_v23  ;;  %v37_v37 = vld.sshfl [vmem:[#allocation1 + $0x10] sm:$0xff pattern:$0x73625140]  ;;  %v50_v39 = vpack.c.bf16 %v36_v33, %v36_v33  ;;  %v932_v41 = vld [vmem:[%s1194_s1 + $0x180] sm:$0xff]  ;;  %v921_v47 = vld [vmem:[%s1194_s1 + $0x128] sm:$0xff] }
  0x18   :  { %487 = vmatpush.bf16.msra.mxu2 %v902_v24  ;;  %v38_v42 = vld.sshfl [vmem:[#allocation1 + $0x18] sm:$0xff pattern:$0x73625140]  ;;  %v922_v43 = vld [vmem:[%s1194_s1 + $0x130] sm:$0xff]  ;;  %v51_v45 = vpack.c.bf16 %v37_v37, %v37_v37  ;;  %v929_v48 = vld [vmem:[%s1194_s1 + $0x168] sm:$0xff] }
  0x19   :  { %500 = vmatpush.bf16.msra.mxu3 %v910_v25  ;;  %v930_v44 = vld [vmem:[%s1194_s1 + $0x170] sm:$0xff]  ;;  %v52_v46 = vpack.c.bf16 %v38_v42, %v38_v42  ;;  %v920_v49 = vld [vmem:[%s1194_s1 + $0x120] sm:$0xff]  ;;  %v919_v51 = vld [vmem:[%s1194_s1 + $0x118] sm:$0xff] }
  0x1a   :  { %462 = vmatpush.bf16.msra.mxu0 %v885_v26  ;;  %v928_v50 = vld [vmem:[%s1194_s1 + $0x160] sm:$0xff]  ;;  %v927_v52 = vld [vmem:[%s1194_s1 + $0x158] sm:$0xff]  ;;  %v41_v53 = vld.sshfl [vmem:[#allocation1 + $0x30] sm:$0xff pattern:$0x73625140] }
  0x1b   :  { %475 = vmatpush.bf16.msra.mxu1 %v893_v27  ;;  %v918_v54 = vld [vmem:[%s1194_s1 + $0x110] sm:$0xff]  ;;  %v55_v56 = vpack.c.bf16 %v41_v53, %v41_v53  ;;  %v917_v57 = vld [vmem:[%s1194_s1 + $0x108] sm:$0xff]  ;;  %v916_v59 = vld [vmem:[%s1194_s1 + $0x100] sm:$0xff] }
  0x1c   :  { %488 = vmatpush.bf16.msra.mxu2 %v901_v28  ;;  %v926_v55 = vld [vmem:[%s1194_s1 + $0x150] sm:$0xff]  ;;  %v925_v58 = vld [vmem:[%s1194_s1 + $0x148] sm:$0xff]  ;;  %v924_v60 = vld [vmem:[%s1194_s1 + $0x140] sm:$0xff] }
  0x1d   :  { %501 = vmatpush.bf16.msra.mxu3 %v909_v31  ;;  %v39_v61 = vld.sshfl [vmem:[#allocation1 + $0x20] sm:$0xff pattern:$0x73625140]  ;;  %v40_v62 = vld.sshfl [vmem:[#allocation1 + $0x28] sm:$0xff pattern:$0x73625140] }
  0x1e   :  { %463 = vmatpush.bf16.msra.mxu0 %v884_v29  ;;  %v53_v63 = vpack.c.bf16 %v39_v61, %v39_v61  ;;  %v54_v0 = vpack.c.bf16 %v40_v62, %v40_v62  ;;  %v938_v7 = vld [vmem:[%s1195_s2] ss:$0 sm:$0xff]  ;;  %v934_v13 = vld [vmem:[%s1196_s3 + $0x8] sm:$0xff] }
  0x1f   :  { %476 = vmatpush.bf16.msra.mxu1 %v892_v30  ;;  %v933_v16 = vld [vmem:[%s1196_s3] sm:$0xff]  ;;  %v936_v22 = vld [vmem:[%s1198_s5 + $0x8] sm:$0xff] }
  0x20   :  { %489 = vmatpush.bf16.msra.mxu2 %v900_v36  ;;  %v935_v24 = vld [vmem:[%s1198_s5] sm:$0xff] }
  0x21   :  { %464 = vmatmul.bf16.vlgmr.msra.gmra.mxu0 %v49_v38  ;;  %502 = vmatpush.bf16.msra.mxu3 %v908_v40  ;;  %v939_v42 = vld [vmem:[%s1197_s4] ss:$0 sm:$0xff]  ;;  %s975_s4 = smov [#allocation2]  }
  0x22   :  { %508 = vmatpush.bf16.msrb.mxu0 %v923_v34  ;;  %477 = vmatmul.bf16.vlgmr.msra.gmra.mxu1 %v50_v39  ;;  %s658_s18 = sshll.u32 %s975_s4, 4  ;;  %s659_s18 = int_to_ptr.vmem [resolvable:$true] %s658_s18 }
  0x23   :  { %521 = vmatpush.bf16.msrb.mxu1 %v931_v35  ;;  %490 = vmatmul.bf16.vlgmr.msra.gmra.mxu2 %v51_v45 }
  0x24   :  { %541 = vmatpush.bf16.msrb.mxu2 %v932_v41  ;;  %503 = vmatmul.bf16.vlgmr.msra.gmra.mxu3 %v52_v46 }
  0x25   :  { %593 = vmatpush.bf16.msrb.mxu3 %v934_v13 }
  0x26   :  { %509 = vmatpush.bf16.msrb.mxu0 %v922_v43 }
  0x27   :  { %522 = vmatpush.bf16.msrb.mxu1 %v930_v44 }
  0x28   :  { %631 = vmatpush.bf16.msra.mxu2 %v936_v22 }
  0x29   :  { %594 = vmatpush.bf16.msrb.mxu3 %v933_v16 }
  0x2a   :  { %510 = vmatpush.bf16.msrb.mxu0 %v921_v47 }
  0x2b   :  { %523 = vmatpush.bf16.msrb.mxu1 %v929_v48  ;;  %v940_v48 = vld [vmem:[%s1199_s6] ss:$0 sm:$0xff] }
  0x2c   :  { %632 = vmatpush.bf16.msra.mxu2 %v935_v24 }
  0x2e   :  { %511 = vmatpush.bf16.msrb.mxu0 %v920_v49 }
  0x2f   :  { %524 = vmatpush.bf16.msrb.mxu1 %v928_v50 }
  0x32   :  { %512 = vmatpush.bf16.msrb.mxu0 %v919_v51 }
  0x33   :  { %525 = vmatpush.bf16.msrb.mxu1 %v927_v52  ;;  %865 = vmatmul.msk.bf16.vlgmr.msrb.gmra.mxu2 %vm452_vm0, %v55_v56 }
  0x36   :  { %513 = vmatpush.bf16.msrb.mxu0 %v918_v54 }
  0x37   :  { %526 = vmatpush.bf16.msrb.mxu1 %v926_v55 }
  0x3a   :  { %514 = vmatpush.bf16.msrb.mxu0 %v917_v57 }
  0x3b   :  { %527 = vmatpush.bf16.msrb.mxu1 %v925_v58 }
  0x3e   :  { %515 = vmatpush.bf16.msrb.mxu0 %v916_v59 }
  0x3f   :  { %528 = vmatpush.bf16.msrb.mxu1 %v924_v60 }
  0x41   :  { %516 = vmatmul.bf16.vlgmr.msrb.gmra.mxu0 %v53_v63 }
  0x42   :  { %529 = vmatmul.bf16.vlgmr.msrb.gmra.mxu1 %v54_v0 }
  0x9e   :  { %v465_v1 = vpop.f32.mrf.mxu0 }
  0x9f   :  { %v478_v2 = vpop.f32.mrf.mxu1  ;;  %v466_v8 = vadd.f32 %v938_v7, %v465_v1 }
  0xa1   :  { %v479_v11 = vadd.f32 %v478_v2, %v466_v8 }
  0xa6   :  { %v467_v3 = vpop.f32.mrf.mxu0  ;;  %v491_v5 = vpop.f32.mrf.mxu2 }
  0xa7   :  { %v480_v4 = vpop.f32.mrf.mxu1  ;;  %v504_v6 = vpop.f32.mrf.mxu3  ;;  %v492_v12 = vadd.f32 %v491_v5, %v479_v11 }
  0xa9   :  { %v505_v15 = vadd.f32 %v504_v6, %v492_v12 }
  0xae   :  { %v493_v9 = vpop.f32.mrf.mxu2 }
  0xaf   :  { %v506_v10 = vpop.f32.mrf.mxu3 }
  0xb6   :  { %v543_v14 = vpop.f32.mrf.mxu2 }
  0xbe   :  { %v517_v17 = vpop.f32.mrf.mxu0  ;;  %v545_v21 = vpop.f32.mrf.mxu2 }
  0xbf   :  { %v530_v18 = vpop.f32.mrf.mxu1  ;;  %v518_v19 = vadd.f32 %v517_v17, %v505_v15 }
  0xc1   :  { %v531_v20 = vadd.f32 %v530_v18, %v518_v19 }
  0xc3   :  { %v544_v23 = vadd.f32 %v543_v14, %v531_v20 }
  0xc5   :  { %v548_v25 = vand.u32 2147483647, %v544_v23  ;;  %v547_v38 = vmax.f32 %v544_v23, 0.0 }
  0xc6   :  { %v519_v26 = vpop.f32.mrf.mxu0 }
  0xc7   :  { %v532_v27 = vpop.f32.mrf.mxu1  ;;  %v549_v28 = vsub.f32 0.0, %v548_v25 }
  0xc9   :  { %v550_v29 = vmul.f32 1.442695, %v549_v28 }
  0xcb   :  { %941 = vpow2.f32 %v550_v29 }
  0xd1   :  { %v942_v30 = vpop.eup %941 }
  0xd2   :  { %v552_v31 = vadd.f32 1.0, %v942_v30  ;;  %v555_v32 = vmul.f32 -0.5, %v942_v30  ;;  %v558_v34 = vand.u32 2147483647, %v942_v30 }
  0xd4   :  { %943 = vlog2.f32 %v552_v31  ;;  %v556_v33 = vadd.f32 1.0, %v555_v32  ;;  %vm559_vm1 = vcmp.lt.f32.partialorder %v558_v34, 0.0004427343 }
  0xd6   :  { %v557_v37 = vmul.f32 %v942_v30, %v556_v33 }
  0xda   :  { %v944_v35 = vpop.eup %943 }
  0xdb   :  { %v554_v36 = vmul.f32 0.6931472, %v944_v35 }
  0xdd   :  { %v560_v39 = vsel %vm559_vm1, %v557_v37, %v554_v36 }
  0xde   :  { %v561_v40 = vadd.f32 %v560_v39, %v547_v38 }
  0xe0   :  { %v562_v41 = vpack.c.bf16 %v561_v40, %v561_v40 }
  0xe2   :  { %874 = vmatmul.msk.bf16.vlgmr.msrb.gmra.mxu3 %vm583_vm2, %v562_v41 }
 0x165   :  { %v596_v43 = vpop.f32.mrf.mxu3 }
 0x166   :  { %v597_v44 = vadd.f32 %v939_v42, %v596_v43 }
 0x168   :  { %v600_v45 = vmax.f32 %v597_v44, 0.0 }
 0x16a   :  { %v601_v46 = vpack.c.bf16 %v600_v45, %v600_v45 }
 0x16c   :  { %883 = vmatmul.msk.bf16.vlgmr.msra.gmra.mxu2 %vm583_vm2, %v601_v46 }
 0x16d   :  { %v598_v47 = vpop.f32.mrf.mxu3 }
 0x1ef   :  { %v634_v49 = vpop.f32.mrf.mxu2 }
 0x1f0   :  { %v635_v50 = vadd.f32 %v940_v48, %v634_v49 }
 0x1f2   :  { %v639_v51 = vsel %vm638_vm3, %v635_v50, -inf }
 0x1f3   :  { %640 = vmax.xlane.f32.xlu0 %v639_v51 }
 0x1f7   :  { %v636_v52 = vpop.f32.mrf.mxu2 }
 0x266   :  { %v641_v53 = vpop.xlane.xlu0 %640 }
 0x267   :  { %v642_v54 = vsub.f32 %v635_v50, %v641_v53 }
 0x269   :  { %v643_v55 = vmul.f32 1.442695, %v642_v54 }
 0x26b   :  { %945 = vpow2.f32 %v643_v55 }
 0x271   :  { %v946_v56 = vpop.eup %945 }
 0x272   :  { %v645_v57 = vsel %vm638_vm3, %v946_v56, 0.0 }
 0x273   :  { %646 = vadd.xlane.f32.xlu0 %v645_v57 }
 0x2e6   :  { %v647_v58 = vpop.xlane.xlu0 %646 }
 0x2e7   :  { %947 = vlog2.f32 %v647_v58 }
 0x2ed   :  { %v948_v59 = vpop.eup %947 }
 0x2ee   :  { %v649_v60 = vmul.f32 0.6931472, %v948_v59 }
 0x2f0   :  { %v650_v61 = vadd.f32 %v649_v60, %v641_v53 }
 0x2f2   :  { %v651_v62 = vsub.f32 %v635_v50, %v650_v61 }
 0x2f4   :  { %652 = vst [vmem:[#allocation2] sm:$0x3] %v651_v62 }
 0x2f5   :  { %663 = dma.vmem_to_hbm [thread:$0]  %s659_s18, 32, %s661_s20, [#allocation3]  }
 0x2f6   :  { %973 = dma.done.wait [#allocation3], 32  }
 0x2f7   :  { %974 = vsyncadd [#allocation3], 4294967264 }
 0x2f8   :  { %668 = vsyncpa [#allocation3], 1 }

</bundles_post_ra>
